<compile_context>
chip_gen: v7x
topology: tpu7x:2x2x1
jax: 0.10.0
libtpu: 0.0.40
codegen_flags: <defaults>
</compile_context>

<pallas_src>
import functools

import jax
import jax.numpy as jnp
import numpy as np
from jax.experimental import pallas as pl
from jax.experimental.pallas import tpu as pltpu


# ----------------------------------------------------------------------------
# Pallas kernel: fused pool -> MLP -> sigmoid gate -> scale, per batch block
# ----------------------------------------------------------------------------
def _channel_attention_kernel(x_ref, w1t_ref, w2t_ref, o_ref, *, inv_hw):
    """One grid step == one block of BB images.

    x_ref   : (BB, C, HW)  input block, native dtype (channels on sublane,
                           pixels on lane)
    w1t_ref : (C, Cr)      fc1 weight (1x1 conv), transposed: pooled @ w1t
    w2t_ref : (Cr, C)      fc2 weight (1x1 conv), transposed: hidden @ w2t
    o_ref   : (BB, C, HW)  output block, native dtype
    """
    x = x_ref[...]                                   # (BB, C, HW), native dtype
    xf = x.astype(jnp.float32)                       # f32 only for stats / gate
    bb = xf.shape[0]

    # Adaptive avg / max pool over the spatial (lane) axis.
    avg = jnp.sum(xf, axis=-1) * inv_hw              # (BB, C)
    mx = jnp.max(xf, axis=-1)                        # (BB, C)

    # Stack avg- and max-pooled vectors -> one batched 2-layer MLP
    # (single pair of MXU contractions instead of two tiny per-path matmuls).
    pooled = jnp.concatenate([avg, mx], axis=0)      # (2*BB, C)
    hidden = jnp.maximum(
        jnp.dot(pooled, w1t_ref[...], preferred_element_type=jnp.float32),
        0.0)                                         # ReLU, (2*BB, Cr)
    y = jnp.dot(hidden, w2t_ref[...],
                preferred_element_type=jnp.float32)  # (2*BB, C)

    gate = jax.nn.sigmoid(y[:bb] + y[bb:])           # (BB, C), sigmoid on EUP

    # Broadcast gate over pixels; single full-tile store in the input dtype.
    o_ref[...] = (xf * gate[:, :, None]).astype(o_ref.dtype)


# ----------------------------------------------------------------------------
# Generation-aware tiling heuristic
# ----------------------------------------------------------------------------
def _tpu_generation_params():
    try:
        kind = jax.devices()[0].device_kind.lower()
    except Exception:  # pragma: no cover - be conservative off-TPU
        kind = ""
    is_v7 = "v7" in kind
    if is_v7:
        # 2 TensorCores/chip, only 64 MiB VMEM per TC.
        return dict(num_tc=2, buf_budget=24 << 20,
                    vmem_limit=40 << 20, vmem_cap=56 << 20)
    # v5e / v6e: 1 TensorCore, 128 MiB VMEM.
    return dict(num_tc=1, buf_budget=40 << 20,
                vmem_limit=64 << 20, vmem_cap=112 << 20)


def _choose_block(B, per_img_bytes, hw):
    num_tc = hw["num_tc"]
    # in + out, each double-buffered -> 4 resident block-sized copies.
    bb = max(1, hw["buf_budget"] // (4 * per_img_bytes))
    bb = min(bb, B)
    if num_tc == 2 and B >= 2:
        bb = min(bb, B // 2)          # keep >= 2 grid steps so both TCs work

    divisors = [d for d in range(1, bb + 1) if B % d == 0]   # always contains 1
    if num_tc == 2:
        # Prefer an even grid-step count so HBM traffic is balanced across TCs.
        even = [d for d in divisors if (B // d) % 2 == 0]
        bb = max(even) if even else max(divisors)
    else:
        bb = max(divisors)

    vmem_limit = hw["vmem_limit"]
    need = 4 * bb * per_img_bytes + (2 << 20)        # + weights / scratch slack
    if need > vmem_limit:
        # Single image already overflows the budget: raise the scoped limit
        # (capped per generation) so the compile still succeeds.
        vmem_limit = min(need, hw["vmem_cap"])
    return bb, int(vmem_limit)


# ----------------------------------------------------------------------------
# Wrapper
# ----------------------------------------------------------------------------
def channel_attention_pallas(x, fc1_w, fc2_w, *, block_b=None, alias_input=False):
    """x: (B, C, H, W); fc1_w: (Cr, C, 1, 1); fc2_w: (C, Cr, 1, 1).

    Output has the same shape and dtype as x.
    """
    B, C, H, W = x.shape
    HW = H * W
    Cr = fc1_w.shape[0]

    x2 = x.reshape(B, C, HW)                          # native dtype, no upcast
    w1t = fc1_w.reshape(Cr, C).astype(jnp.float32).T  # (C, Cr), tiny, resident
    w2t = fc2_w.reshape(C, Cr).astype(jnp.float32).T  # (Cr, C), tiny, resident

    per_img_bytes = C * HW * jnp.dtype(x.dtype).itemsize
    hw_params = _tpu_generation_params()
    auto_bb, vmem_limit = _choose_block(B, per_img_bytes, hw_params)
    if block_b is None:
        block_b = auto_bb

    grid = (B // block_b,)
    kernel = functools.partial(_channel_attention_kernel, inv_hw=1.0 / HW)

    out = pl.pallas_call(
        kernel,
        out_shape=jax.ShapeDtypeStruct((B, C, HW), x.dtype),
        grid=grid,
        in_specs=[
            pl.BlockSpec((block_b, C, HW), lambda b: (b, 0, 0)),   # x block
            pl.BlockSpec((C, Cr), lambda b: (0, 0)),               # fc1^T (resident)
            pl.BlockSpec((Cr, C), lambda b: (0, 0)),               # fc2^T (resident)
        ],
        out_specs=pl.BlockSpec((block_b, C, HW), lambda b: (b, 0, 0)),
        compiler_params=pltpu.CompilerParams(
            dimension_semantics=("parallel",),
            vmem_limit_bytes=vmem_limit),
        # Optionally reuse x's HBM buffer for the output (capacity win).
        input_output_aliases=({0: 0} if alias_input else {}),
    )(x2, w1t, w2t)
    return out.reshape(B, C, H, W)


# ----------------------------------------------------------------------------
# Pure-JAX reference (mirrors the torch forward) for verification
# ----------------------------------------------------------------------------
def reference(x, fc1_w, fc2_w):
    B, C, H, W = x.shape
    Cr = fc1_w.shape[0]
    w1 = fc1_w.reshape(Cr, C)
    w2 = fc2_w.reshape(C, Cr)

    avg = x.mean(axis=(2, 3))                        # (B, C)
    mx = x.max(axis=(2, 3))                          # (B, C)

    def mlp(v):
        return jnp.maximum(v @ w1.T, 0.0) @ w2.T

    gate = jax.nn.sigmoid(mlp(avg) + mlp(mx))        # (B, C)
    return x * gate[:, :, None, None]


# ----------------------------------------------------------------------------
if __name__ == "__main__":
    # Small shapes consistent with the module: B=2, in_planes=32, 16x16 spatial.
    B, C, H, W = 2, 32, 16, 16
    ratio = 0.25
    Cr = int(C * ratio)                              # 8 hidden channels

    key = jax.random.PRNGKey(0)
    kx, k1, k2 = jax.random.split(key, 3)

    # Module parameter shapes: fc1 Conv2d weight (Cr, C, 1, 1) (no bias),
    #                          fc2 Conv2d weight (C, Cr, 1, 1) (no bias).
    x = jax.random.normal(kx, (B, C, H, W), dtype=jnp.float32)
    fc1_w = jax.random.normal(k1, (Cr, C, 1, 1), dtype=jnp.float32) * 0.1
    fc2_w = jax.random.normal(k2, (C, Cr, 1, 1), dtype=jnp.float32) * 0.1

    # f32 path.
    out = jax.block_until_ready(channel_attention_pallas(x, fc1_w, fc2_w))
    ref = reference(x, fc1_w, fc2_w)
    np.testing.assert_allclose(np.asarray(out), np.asarray(ref),
                               rtol=1e-5, atol=1e-5)
    assert out.dtype == x.dtype

    # bf16 path: input dtype preserved end-to-end (no wrapper upcast).
    xb = x.astype(jnp.bfloat16)
    out_b = jax.block_until_ready(channel_attention_pallas(xb, fc1_w, fc2_w))
    assert out_b.dtype == jnp.bfloat16
    ref_b = reference(xb.astype(jnp.float32), fc1_w, fc2_w)
    np.testing.assert_allclose(np.asarray(out_b).astype(np.float32),
                               np.asarray(ref_b), rtol=5e-2, atol=5e-2)

    print("KERNEL_OK")
</pallas_src>

<mosaic_0001>
module attributes {stable_mosaic.version = 11 : i64} {
  func.func @_channel_attention_kernel(%arg0: i32, %arg1: memref<2x32x256xf32, #tpu.memory_space<vmem>>, %arg2: memref<32x8xf32, #tpu.memory_space<vmem>>, %arg3: memref<8x32xf32, #tpu.memory_space<vmem>>, %arg4: memref<2x32x256xf32, #tpu.memory_space<vmem>>) attributes {dimension_semantics = [#tpu.dimension_semantics<parallel>], iteration_bounds = array<i64: 1>, scalar_prefetch = 0 : i64, scratch_operands = 0 : i64, tpu.core_type = #tpu.core_type<tc>, window_params = [{transform_indices = @transform_0, window_bounds = array<i64: 2, 32, 256>}, {pipeline_mode = #tpu.pipeline_mode<synchronous>, transform_indices = @transform_1, window_bounds = array<i64: 32, 8>}, {pipeline_mode = #tpu.pipeline_mode<synchronous>, transform_indices = @transform_2, window_bounds = array<i64: 8, 32>}, {transform_indices = @transform_3, window_bounds = array<i64: 2, 32, 256>}]} {
    %c0 = arith.constant 0 : index
    %c0_0 = arith.constant 0 : index
    %c0_1 = arith.constant 0 : index
    %0 = vector.load %arg1[%c0, %c0_0, %c0_1] : memref<2x32x256xf32, #tpu.memory_space<vmem>>, vector<2x32x256xf32>
    %cst = arith.constant dense<0.000000e+00> : vector<2x32xf32>
    %1 = vector.multi_reduction <add>, %0, %cst [2] : vector<2x32x256xf32> to vector<2x32xf32>
    %cst_2 = arith.constant 3.906250e-03 : f32
    %2 = vector.broadcast %cst_2 : f32 to vector<2x32xf32>
    %3 = arith.mulf %1, %2 : vector<2x32xf32>
    %cst_3 = arith.constant dense<0xFF800000> : vector<2x32xf32>
    %4 = vector.multi_reduction <maximumf>, %0, %cst_3 [2] : vector<2x32x256xf32> to vector<2x32xf32>
    %5 = tpu.concatenate %3, %4 in 0 : vector<2x32xf32>, vector<2x32xf32> -> vector<4x32xf32>
    %c0_4 = arith.constant 0 : index
    %c0_5 = arith.constant 0 : index
    %6 = vector.load %arg2[%c0_4, %c0_5] : memref<32x8xf32, #tpu.memory_space<vmem>>, vector<32x8xf32>
    %cst_6 = arith.constant dense<0.000000e+00> : vector<4x8xf32>
    %7 = tpu.matmul %5, %6, %cst_6 {dimension_numbers = #tpu.dot_dimension_numbers<[1], [0], [0], [1], [0, 0, 1, 1], [], []>} : vector<4x32xf32>, vector<32x8xf32>, vector<4x8xf32> -> vector<4x8xf32>
    %cst_7 = arith.constant 0.000000e+00 : f32
    %8 = vector.broadcast %cst_7 : f32 to vector<4x8xf32>
    %9 = arith.maximumf %7, %8 : vector<4x8xf32>
    %c0_8 = arith.constant 0 : index
    %c0_9 = arith.constant 0 : index
    %10 = vector.load %arg3[%c0_8, %c0_9] : memref<8x32xf32, #tpu.memory_space<vmem>>, vector<8x32xf32>
    %cst_10 = arith.constant dense<0.000000e+00> : vector<4x32xf32>
    %11 = tpu.matmul %9, %10, %cst_10 {dimension_numbers = #tpu.dot_dimension_numbers<[1], [0], [0], [1], [0, 0, 1, 1], [], []>} : vector<4x8xf32>, vector<8x32xf32>, vector<4x32xf32> -> vector<4x32xf32>
    %12 = vector.extract_strided_slice %11 {offsets = [0, 0], sizes = [2, 32], strides = [1, 1]} : vector<4x32xf32> to vector<2x32xf32>
    %13 = vector.extract_strided_slice %11 {offsets = [2, 0], sizes = [2, 32], strides = [1, 1]} : vector<4x32xf32> to vector<2x32xf32>
    %14 = arith.addf %12, %13 : vector<2x32xf32>
    %15 = arith.negf %14 : vector<2x32xf32>
    %16 = math.exp %15 : vector<2x32xf32>
    %cst_11 = arith.constant 1.000000e+00 : f32
    %17 = vector.broadcast %cst_11 : f32 to vector<2x32xf32>
    %18 = arith.addf %17, %16 : vector<2x32xf32>
    %19 = arith.divf %17, %18 : vector<2x32xf32>
    %20 = vector.shape_cast %19 : vector<2x32xf32> to vector<2x32x1xf32>
    %21 = vector.broadcast %20 : vector<2x32x1xf32> to vector<2x32x256xf32>
    %22 = arith.mulf %0, %21 : vector<2x32x256xf32>
    %c0_12 = arith.constant 0 : index
    %c0_13 = arith.constant 0 : index
    %c0_14 = arith.constant 0 : index
    %23 = vector.load %arg4[%c0_12, %c0_13, %c0_14] : memref<2x32x256xf32, #tpu.memory_space<vmem>>, vector<2x32x256xf32>
    tpu.vector_store %arg4[%c0_12, %c0_13, %c0_14], %22 {strides = array<i32>} : memref<2x32x256xf32, #tpu.memory_space<vmem>>, vector<2x32x256xf32>,
    return
  }
  func.func @transform_0(%arg0: i32) -> (i32, i32, i32) {
    %c0_i32 = arith.constant 0 : i32
    %c0_i32_0 = arith.constant 0 : i32
    %c0_i32_1 = arith.constant 0 : i32
    return %arg0, %c0_i32, %c0_i32_0 : i32, i32, i32
  }
  func.func @transform_1(%arg0: i32) -> (i32, i32) {
    %c0_i32 = arith.constant 0 : i32
    %c0_i32_0 = arith.constant 0 : i32
    %c0_i32_1 = arith.constant 0 : i32
    return %c0_i32, %c0_i32_0 : i32, i32
  }
  func.func @transform_2(%arg0: i32) -> (i32, i32) {
    %c0_i32 = arith.constant 0 : i32
    %c0_i32_0 = arith.constant 0 : i32
    %c0_i32_1 = arith.constant 0 : i32
    return %c0_i32, %c0_i32_0 : i32, i32
  }
  func.func @transform_3(%arg0: i32) -> (i32, i32, i32) {
    %c0_i32 = arith.constant 0 : i32
    %c0_i32_0 = arith.constant 0 : i32
    %c0_i32_1 = arith.constant 0 : i32
    return %arg0, %c0_i32, %c0_i32_0 : i32, i32, i32
  }
}

</mosaic_0001>

<bundles_post_ra>
// kernel: tpu_custom_call.1
= control target key start
LH: loop header
LB: loop body
LE: loop exit
PB: predicated region body
PF: predicated region fallthrough
CT: control target
= control target key end

     0   :  { %8 = vsyncpa [#allocation3], 0  ;;  %s814_s0 = inlined_call_operand.hbm [shape: f32[2,32,256], index: 0, kind: input, shape index: {}]   ;;  %s815_s1 = inlined_call_operand.hbm [shape: f32[32,8], index: 1, kind: input, shape index: {}]   ;;  %s816_s2 = inlined_call_operand.hbm [shape: f32[8,32], index: 2, kind: input, shape index: {}]   ;;  %s817_s3 = inlined_call_operand.hbm [shape: f32[2,32,256], index: 3, kind: output, shape index: {}]  }
   0x1   :  { %9 = vsyncpa [#allocation6], 0 }
   0x2   :  { %10 = vsyncpa [#allocation4], 0  ;;  %s627_s12 = smov [#allocation5]   ;;  %s533_s16 = scalar_lea.hbm %s815_s1, 512 }
   0x3   :  { %s28_s13 = sshll.u32 %s627_s12, 4  ;;  %p534_p0 = scmp.ne.s32.totalorder %s815_s1, %s533_s16  ;;  %s29_s13 = int_to_ptr.vmem [resolvable:$true] %s28_s13 }
   0x4   :  { %p537_p1 = scmp.lt.u32.totalorder %s533_s16, %s815_s1 }
   0x6   :  { %p539_p2 = pnand %p537_p1, %p534_p0 }
   0x8   :  { %542 = shalt.err (!%p539_p2)
}
   0x9   :  { %s543_s21 = scalar_lea.vmem %s29_s13, 512  ;;  %p548_p4 = scmp.lt.s32.totalorder %s29_s13, %s29_s13 }
   0xa   :  { %p544_p3 = scmp.ne.s32.totalorder %s29_s13, %s543_s21  ;;  %p549_p5 = scmp.lt.s32.totalorder %s543_s21, %s543_s21 }
   0xc   :  { %p550_p6 = por %p549_p5, %p548_p4 }
   0xe   :  { %p551_p7 = pnand %p550_p6, %p544_p3 }
  0x10   :  { %554 = shalt.err (!%p551_p7)
}
  0x11   :  { %s628_s22 = smov 128   ;;  %s629_s23 = smov 8  }
  0x12   :  { %34 = dma.hbm_to_vmem [thread:$0]  %s815_s1, 512, %s29_s13, [#allocation6], %s628_s22, %s628_s22, %s629_s23  }
  0x13   :  { %s630_s26 = smov [#allocation2]   ;;  %s555_s30 = scalar_lea.hbm %s814_s0, 2048 }
  0x14   :  { %s16_s27 = sshll.u32 %s630_s26, 4  ;;  %p556_p8 = scmp.ne.s32.totalorder %s814_s0, %s555_s30  ;;  %s17_s27 = int_to_ptr.vmem [resolvable:$true] %s16_s27 }
  0x15   :  { %p559_p9 = scmp.lt.u32.totalorder %s555_s30, %s814_s0 }
  0x17   :  { %p561_p10 = pnand %p559_p9, %p556_p8 }
  0x19   :  { %564 = shalt.err (!%p561_p10)
}
  0x1a   :  { %s565_s8 = scalar_lea.vmem %s17_s27, 2048  ;;  %p570_p12 = scmp.lt.s32.totalorder %s17_s27, %s17_s27 }
  0x1b   :  { %p566_p11 = scmp.ne.s32.totalorder %s17_s27, %s565_s8  ;;  %p571_p13 = scmp.lt.s32.totalorder %s565_s8, %s565_s8 }
  0x1d   :  { %p572_p0 = por %p571_p13, %p570_p12 }
  0x1f   :  { %p573_p1 = pnand %p572_p0, %p566_p11 }
  0x21   :  { %576 = shalt.err (!%p573_p1)
}
  0x22   :  { %s631_s1 = smov 256   ;;  %s632_s9 = smov 16  }
  0x23   :  { %22 = dma.hbm_to_vmem [thread:$0]  %s814_s0, 2048, %s17_s27, [#allocation3], %s631_s1, %s631_s1, %s632_s9  }
  0x24   :  { %s633_s12 = smov [#allocation7]   ;;  %s577_s16 = scalar_lea.hbm %s816_s2, 128 }
  0x25   :  { %s41_s13 = sshll.u32 %s633_s12, 4  ;;  %p578_p2 = scmp.ne.s32.totalorder %s816_s2, %s577_s16  ;;  %s42_s13 = int_to_ptr.vmem [resolvable:$true] %s41_s13 }
  0x26   :  { %p581_p3 = scmp.lt.u32.totalorder %s577_s16, %s816_s2 }
  0x28   :  { %p583_p4 = pnand %p581_p3, %p578_p2 }
  0x2a   :  { %586 = shalt.err (!%p583_p4)
}
  0x2b   :  { %s587_s21 = scalar_lea.vmem %s42_s13, 128  ;;  %p592_p6 = scmp.lt.s32.totalorder %s42_s13, %s42_s13 }
  0x2c   :  { %p588_p5 = scmp.ne.s32.totalorder %s42_s13, %s587_s21  ;;  %p593_p7 = scmp.lt.s32.totalorder %s587_s21, %s587_s21 }
  0x2e   :  { %p594_p8 = por %p593_p7, %p592_p6 }
  0x30   :  { %p595_p9 = pnand %p594_p8, %p588_p5 }
  0x32   :  { %598 = shalt.err (!%p595_p9)
}
  0x33   :  { %44 = dma.hbm_to_vmem [thread:$0]  %s816_s2, 128, %s42_s13, [#allocation6]  }
  0x34   :  { %621 = dma.done.wait [#allocation3], 2048  }
  0x35   :  { %622 = vsyncadd [#allocation3], 4294965248 }
  0x36   :  { %623 = dma.done.wait [#allocation6], 640  }
  0x37   :  { %624 = vsyncadd [#allocation6], 4294966656  ;;  %v697_v0 = vld [vmem:[#allocation2 + $0x40] sm:$0xff]  ;;  %v699_v1 = vld [vmem:[#allocation2 + $0x48] sm:$0xff]  ;;  %v634_v35 = vmov 0.0|0.0   ;;  %vm635_vm0 = vmmov 0   ;;  %v134_v45 = vlaneseq }
  0x38   :  { %v701_v2 = vld [vmem:[#allocation2] sm:$0xff]  ;;  %v82_v3 = vadd.f32 %v699_v1, %v697_v0  ;;  %v705_v4 = vld [vmem:[#allocation2 + $0x8] sm:$0xff]  ;;  %v707_v5 = vld [vmem:[#allocation2 + $0x50] sm:$0xff]  ;;  %v114_v27 = vmax.f32 %v697_v0, %v699_v1  ;;  %512 = vmatprep.subr.bf16.mxu0 %v634_v35  ;;  %v636_v39 = vmov 0.0   ;;  %vm145_vm1 = vcmask 130112   ;;  %s637_s2 = smov [#allocation8]  }
  0x39   :  { %v709_v6 = vld [vmem:[#allocation2 + $0x58] sm:$0xff]  ;;  %v70_v7 = vadd.f32 %v705_v4, %v701_v2  ;;  %v713_v8 = vld [vmem:[#allocation2 + $0x10] sm:$0xff]  ;;  %v721_v12 = vld [vmem:[#allocation2 + $0x60] sm:$0xff]  ;;  %v102_v25 = vmax.f32 %v701_v2, %v705_v4  ;;  %504 = vmatprep.mubr.msk.f32.mxu0 %vm635_vm0, %v636_v39  ;;  %507 = vmatprep.subr.mxu1 %v636_v39  ;;  %v135_v48 = vand.u32 127, %v134_v45  ;;  %v761_v50 = vshrl.u32 %v134_v45, 7  ;;  %s473_s23 = sshll.u32 %s637_s2, 4  ;;  %s474_s23 = int_to_ptr.vmem [resolvable:$true] %s473_s23 }
  0x3a   :  { %v715_v9 = vld [vmem:[#allocation2 + $0x18] sm:$0xff]  ;;  %83 = vadd.xlane.f32.xlu1 %v82_v3  ;;  %v85_v10 = vadd.f32 %v709_v6, %v707_v5  ;;  %v723_v13 = vld [vmem:[#allocation2 + $0x68] sm:$0xff]  ;;  %v725_v14 = vld [vmem:[#allocation2 + $0x20] sm:$0xff]  ;;  %v117_v26 = vmax.f32 %v707_v5, %v709_v6  ;;  %509 = vmatprep.mubr.msk.f32.mxu1 %vm635_vm0, %v636_v39  ;;  %vm152_vm2 = vcmask 195712   ;;  %vm159_vm3 = vcmask 261312   ;;  %s599_s24 = scalar_lea.vmem %s474_s23, 2048  ;;  %p604_p11 = scmp.lt.s32.totalorder %s474_s23, %s474_s23 }
  0x3b   :  { %71 = vadd.xlane.f32.xlu0 %v70_v7  ;;  %v73_v11 = vadd.f32 %v715_v9, %v713_v8  ;;  %v727_v15 = vld [vmem:[#allocation2 + $0x28] sm:$0xff]  ;;  %v88_v16 = vadd.f32 %v723_v13, %v721_v12  ;;  %v733_v18 = vld [vmem:[#allocation2 + $0x70] sm:$0xff]  ;;  %v735_v19 = vld [vmem:[#allocation2 + $0x78] sm:$0xff]  ;;  %v105_v24 = vmax.f32 %v713_v8, %v715_v9  ;;  %v120_v28 = vmax.f32 %v721_v12, %v723_v13  ;;  %p600_p10 = scmp.ne.s32.totalorder %s474_s23, %s599_s24  ;;  %p605_p12 = scmp.lt.s32.totalorder %s599_s24, %s599_s24 }
  0x3c   :  { %v76_v17 = vadd.f32 %v727_v15, %v725_v14  ;;  %v737_v20 = vld [vmem:[#allocation2 + $0x30] sm:$0xff]  ;;  %v739_v21 = vld [vmem:[#allocation2 + $0x38] sm:$0xff]  ;;  %v91_v22 = vadd.f32 %v735_v19, %v733_v18  ;;  %v108_v29 = vmax.f32 %v725_v14, %v727_v15  ;;  %v123_v30 = vmax.f32 %v733_v18, %v735_v19  ;;  %v234_v32 = vld [vmem:[#allocation5] sm:$0xff] }
  0x3d   :  { %v79_v23 = vadd.f32 %v739_v21, %v737_v20  ;;  %v111_v31 = vmax.f32 %v737_v20, %v739_v21  ;;  %v235_v33 = vld [vmem:[#allocation5 + $0x8] sm:$0xff]  ;;  %v236_v36 = vld [vmem:[#allocation5 + $0x10] sm:$0xff]  ;;  %v237_v37 = vld [vmem:[#allocation5 + $0x18] sm:$0xff]  ;;  %v140_v51 = vadd.s32 4294967288, %v135_v48  ;;  %v147_v52 = vadd.s32 4294967280, %v135_v48  ;;  %p606_p13 = por %p605_p12, %p604_p11 }
  0x3e   :  { %86 = vadd.xlane.f32.xlu1 %v85_v10  ;;  %v513_v34 = vpack.c.bf16 %v235_v33, %v234_v32  ;;  %v516_v38 = vpack.c.bf16 %v237_v37, %v236_v36  ;;  %v154_v54 = vadd.s32 4294967272, %v135_v48  ;;  %v138_v56 = vsub.s32 %v135_v48, %v761_v50 }
  0x3f   :  { %74 = vadd.xlane.f32.xlu0 %v73_v11  ;;  %v143_v57 = vsub.s32 %v140_v51, %v761_v50  ;;  %v150_v59 = vsub.s32 %v147_v52, %v761_v50  ;;  %vm180_vm4 = vcmask 1041409   ;;  %vm229_vm5 = vcmask 1043459   ;;  %p607_p0 = pnand %p606_p13, %p600_p10 }
  0x40   :  { %514 = vmatpush3.bf16.msra.mxu0 %v513_v34  ;;  %v157_v10 = vsub.s32 %v154_v54, %v761_v50  ;;  %vm232_vm6 = vcmask 1041408   ;;  %vm238_vm7 = vcmask 261120   ;;  %vm314_vm8 = vcmask 64512  }
  0x41   :  { %515 = vmatprep.subr.bf16.mxu0 %v634_v35 }
  0x42   :  { %89 = vadd.xlane.f32.xlu1 %v88_v16 }
  0x43   :  { %77 = vadd.xlane.f32.xlu0 %v76_v17 }
  0x44   :  { %517 = vmatpush3.bf16.msra.mxu0 %v516_v38 }
  0x46   :  { %92 = vadd.xlane.f32.xlu1 %v91_v22 }
  0x47   :  { %80 = vadd.xlane.f32.xlu0 %v79_v23 }
  0x4a   :  { %106 = vmax.xlane.f32.xlu1 %v105_v24 }
  0x4b   :  { %103 = vmax.xlane.f32.xlu0 %v102_v25 }
  0x4e   :  { %118 = vmax.xlane.f32.xlu1 %v117_v26 }
  0x4f   :  { %115 = vmax.xlane.f32.xlu0 %v114_v27 }
  0x52   :  { %121 = vmax.xlane.f32.xlu1 %v120_v28 }
  0x53   :  { %109 = vmax.xlane.f32.xlu0 %v108_v29 }
  0x56   :  { %124 = vmax.xlane.f32.xlu1 %v123_v30 }
  0x57   :  { %112 = vmax.xlane.f32.xlu0 %v111_v31 }
  0xc7   :  { %v84_v40 = vpop.xlane.xlu1 %83 }
  0xc8   :  { %v72_v41 = vpop.xlane.xlu0 %71  ;;  %v98_v60 = vmul.f32 0.00390625, %v84_v40 }
  0xc9   :  { %v94_v61 = vmul.f32 0.00390625, %v72_v41 }
  0xca   :  { %v164_v23 = vrot.slane %v98_v60, %v138_v56 }
  0xcb   :  { %v87_v42 = vpop.xlane.xlu1 %86  ;;  %v139_v24 = vrot.slane %v94_v61, %v138_v56 }
  0xcc   :  { %v75_v43 = vpop.xlane.xlu0 %74  ;;  %v99_v58 = vmul.f32 0.00390625, %v87_v42 }
  0xcd   :  { %v95_v62 = vmul.f32 0.00390625, %v75_v43 }
  0xce   :  { %v168_v22 = vrot.slane %v99_v58, %v143_v57  ;;  %v313_v58 = vld [vmem:[#allocation7] sm:$0xff] }
  0xcf   :  { %v90_v44 = vpop.xlane.xlu1 %89  ;;  %v144_v25 = vrot.slane %v95_v62, %v143_v57  ;;  %508 = vmatpush3.msra.mxu1 %v313_v58 }
  0xd0   :  { %v78_v46 = vpop.xlane.xlu0 %77  ;;  %v100_v63 = vmul.f32 0.00390625, %v90_v44  ;;  %v169_v37 = vsel %vm145_vm1, %v168_v22, %v164_v23 }
  0xd1   :  { %v96_v7 = vmul.f32 0.00390625, %v78_v46  ;;  %v146_v39 = vsel %vm145_vm1, %v144_v25, %v139_v24  ;;  %v419_v24 = vsub.s32 1, %v761_v50 }
  0xd2   :  { %v173_v26 = vrot.slane %v100_v63, %v150_v59 }
  0xd3   :  { %v93_v47 = vpop.xlane.xlu1 %92  ;;  %v151_v28 = vrot.slane %v96_v7, %v150_v59 }
  0xd4   :  { %v81_v49 = vpop.xlane.xlu0 %80  ;;  %v101_v11 = vmul.f32 0.00390625, %v93_v47  ;;  %v174_v40 = vsel %vm152_vm2, %v173_v26, %v169_v37 }
  0xd5   :  { %v97_v17 = vmul.f32 0.00390625, %v81_v49  ;;  %v153_v42 = vsel %vm152_vm2, %v151_v28, %v146_v39 }
  0xd6   :  { %v178_v29 = vrot.slane %v101_v11, %v157_v10 }
  0xd7   :  { %v107_v53 = vpop.xlane.xlu1 %106  ;;  %v158_v33 = vrot.slane %v97_v17, %v157_v10  ;;  %v400_v17 = vsub.s32 0, %v761_v50 }
  0xd8   :  { %v104_v55 = vpop.xlane.xlu0 %103  ;;  %v198_v34 = vrot.slane %v107_v53, %v143_v57  ;;  %v179_v43 = vsel %vm159_vm3, %v178_v29, %v174_v40 }
  0xd9   :  { %v194_v35 = vrot.slane %v104_v55, %v138_v56  ;;  %v160_v47 = vsel %vm159_vm3, %v158_v33, %v153_v42 }
  0xda   :  { %v181_v55 = vsel %vm180_vm4, %v179_v43, %v160_v47 }
  0xdb   :  { %v119_v3 = vpop.xlane.xlu1 %118  ;;  %v199_v48 = vsel %vm145_vm1, %v198_v34, %v194_v35 }
  0xdc   :  { %v116_v16 = vpop.xlane.xlu0 %115  ;;  %v217_v30 = vrot.slane %v119_v3, %v143_v57 }
  0xdd   :  { %v213_v31 = vrot.slane %v116_v16, %v138_v56 }
  0xdf   :  { %v122_v27 = vpop.xlane.xlu1 %121  ;;  %v218_v44 = vsel %vm145_vm1, %v217_v30, %v213_v31 }
  0xe0   :  { %v110_v32 = vpop.xlane.xlu0 %109  ;;  %v222_v36 = vrot.slane %v122_v27, %v150_v59 }
  0xe1   :  { %v203_v38 = vrot.slane %v110_v32, %v150_v59 }
  0xe2   :  { %v223_v49 = vsel %vm152_vm2, %v222_v36, %v218_v44 }
  0xe3   :  { %v125_v41 = vpop.xlane.xlu1 %124  ;;  %v204_v52 = vsel %vm152_vm2, %v203_v38, %v199_v48 }
  0xe4   :  { %v227_v45 = vrot.slane %v125_v41, %v157_v10  ;;  %v113_v46 = vpop.xlane.xlu0 %112 }
  0xe5   :  { %v208_v51 = vrot.slane %v113_v46, %v157_v10 }
  0xe6   :  { %v228_v53 = vsel %vm159_vm3, %v227_v45, %v223_v49 }
  0xe7   :  { %v209_v54 = vsel %vm159_vm3, %v208_v51, %v204_v52 }
  0xe8   :  { %v230_v56 = vsel %vm229_vm5, %v228_v53, %v209_v54 }
  0xe9   :  { %v233_v57 = vsel %vm232_vm6, %v181_v55, %v230_v56 }
  0xea   :  { %505 = vmatmul.mubr.msk.f32.vlgmr.msra.gmra.mrb[0].mxu0 %vm238_vm7, %v233_v57 }
 0x1bd   :  { %v308_v59 = vpop.f32.mrb[0].mxu0 }
 0x1be   :  { %v312_v60 = vmax.f32 %v308_v59, 0.0  ;;  %v506_v61 = vpop.f32.mrb[1].mxu0 }
 0x1c0   :  { %510 = vmatmul.mubr.msk.f32.vlgmr.msra.gmra.mrb[0].mxu1 %vm314_vm8, %v312_v60 }
 0x293   :  { %v384_v62 = vpop.f32.mrb[0].mxu1 }
 0x294   :  { %v389_v63 = vrot.slane %v384_v62, 2  ;;  %v511_v3 = vpop.f32.mrb[1].mxu1 }
 0x296   :  { %v391_v7 = vadd.f32 %v389_v63, %v384_v62 }
 0x298   :  { %v488_v10 = vmul.f32 -1.442695, %v391_v7 }
 0x29a   :  { %529 = vpow2.f32 %v488_v10 }
 0x2a4   :  { %v530_v11 = vpop.eup %529 }
 0x2a5   :  { %v395_v16 = vadd.f32 1.0, %v530_v11 }
 0x2a7   :  { %531 = vrcp.f32 %v395_v16 }
 0x2b1   :  { %v532_v22 = vpop.eup %531 }
 0x2b2   :  { %v401_v23 = vrot.slane %v532_v22, %v400_v17  ;;  %v420_v25 = vrot.slane %v532_v22, %v419_v24 }
 0x2b4   :  { %407 = vbcast.lane.b32.xlu1 %v401_v23, 264  ;;  %403 = vbcast.lane.b32.xlu0 %v401_v23, 256 }
 0x2b8   :  { %411 = vbcast.lane.b32.xlu1 %v401_v23, 272  ;;  %422 = vbcast.lane.b32.xlu0 %v420_v25, 256 }
 0x2bc   :  { %415 = vbcast.lane.b32.xlu1 %v401_v23, 280  ;;  %430 = vbcast.lane.b32.xlu0 %v420_v25, 272 }
 0x2c0   :  { %426 = vbcast.lane.b32.xlu1 %v420_v25, 264 }
 0x2c4   :  { %434 = vbcast.lane.b32.xlu1 %v420_v25, 280 }
 0x326   :  { %v408_v26 = vpop.permute.xlu1 %407  ;;  %v404_v27 = vpop.permute.xlu0 %403 }
 0x327   :  { %v438_v28 = vmul.f32 %v408_v26, %v713_v8  ;;  %v439_v29 = vmul.f32 %v408_v26, %v715_v9  ;;  %v436_v30 = vmul.f32 %v404_v27, %v701_v2  ;;  %v437_v31 = vmul.f32 %v404_v27, %v705_v4 }
 0x329   :  { %454 = vst [vmem:[#allocation8 + $0x10] sm:$0xff] %v438_v28  ;;  %455 = vst [vmem:[#allocation8 + $0x18] sm:$0xff] %v439_v29 }
 0x32a   :  { %452 = vst [vmem:[#allocation8] sm:$0xff] %v436_v30  ;;  %453 = vst [vmem:[#allocation8 + $0x8] sm:$0xff] %v437_v31  ;;  %v412_v50 = vpop.permute.xlu1 %411  ;;  %v423_v32 = vpop.permute.xlu0 %422 }
 0x32b   :  { %v440_v33 = vmul.f32 %v412_v50, %v725_v14  ;;  %v441_v34 = vmul.f32 %v412_v50, %v727_v15  ;;  %v444_v35 = vmul.f32 %v423_v32, %v697_v0  ;;  %v445_v8 = vmul.f32 %v423_v32, %v699_v1 }
 0x32d   :  { %456 = vst [vmem:[#allocation8 + $0x20] sm:$0xff] %v440_v33  ;;  %457 = vst [vmem:[#allocation8 + $0x28] sm:$0xff] %v441_v34 }
 0x32e   :  { %460 = vst [vmem:[#allocation8 + $0x40] sm:$0xff] %v444_v35  ;;  %461 = vst [vmem:[#allocation8 + $0x48] sm:$0xff] %v445_v8  ;;  %v416_v2 = vpop.permute.xlu1 %415  ;;  %v431_v4 = vpop.permute.xlu0 %430 }
 0x32f   :  { %v442_v9 = vmul.f32 %v416_v2, %v737_v20  ;;  %v443_v36 = vmul.f32 %v416_v2, %v739_v21  ;;  %v448_v37 = vmul.f32 %v431_v4, %v721_v12  ;;  %v449_v14 = vmul.f32 %v431_v4, %v723_v13 }
 0x331   :  { %458 = vst [vmem:[#allocation8 + $0x30] sm:$0xff] %v442_v9  ;;  %459 = vst [vmem:[#allocation8 + $0x38] sm:$0xff] %v443_v36 }
 0x332   :  { %464 = vst [vmem:[#allocation8 + $0x60] sm:$0xff] %v448_v37  ;;  %465 = vst [vmem:[#allocation8 + $0x68] sm:$0xff] %v449_v14  ;;  %v427_v0 = vpop.permute.xlu1 %426 }
 0x333   :  { %v446_v1 = vmul.f32 %v427_v0, %v707_v5  ;;  %v447_v15 = vmul.f32 %v427_v0, %v709_v6 }
 0x335   :  { %462 = vst [vmem:[#allocation8 + $0x50] sm:$0xff] %v446_v1  ;;  %463 = vst [vmem:[#allocation8 + $0x58] sm:$0xff] %v447_v15 }
 0x336   :  { %v435_v20 = vpop.permute.xlu1 %434 }
 0x337   :  { %v450_v21 = vmul.f32 %v435_v20, %v733_v18  ;;  %v451_v12 = vmul.f32 %v435_v20, %v735_v19 }
 0x339   :  { %466 = vst [vmem:[#allocation8 + $0x70] sm:$0xff] %v450_v21  ;;  %467 = vst [vmem:[#allocation8 + $0x78] sm:$0xff] %v451_v12 }
 0x33a   :  { %610 = shalt.err (!%p607_p0)
}
 0x33b   :  { %s611_s27 = scalar_lea.hbm %s817_s3, 2048 }
 0x33c   :  { %p612_p1 = scmp.ne.s32.totalorder %s817_s3, %s611_s27  ;;  %p615_p2 = scmp.lt.u32.totalorder %s611_s27, %s817_s3 }
 0x33e   :  { %p617_p3 = pnand %p615_p2, %p612_p1 }
 0x340   :  { %620 = shalt.err (!%p617_p3)
}
 0x341   :  { %479 = dma.vmem_to_hbm [thread:$0]  %s474_s23, 2048, %s817_s3, [#allocation4], %s631_s1, %s631_s1, %s632_s9  }
 0x342   :  { %625 = dma.done.wait [#allocation4], 2048  }
 0x343   :  { %626 = vsyncadd [#allocation4], 4294965248 }
 0x344   :  { %483 = vsyncpa [#allocation3], 1 }
 0x345   :  { %484 = vsyncpa [#allocation6], 1 }
 0x346   :  { %485 = vsyncpa [#allocation4], 1 }

</bundles_post_ra>
